<compile_context>
chip_gen: v6e
topology: v6e:2x2x1
jax: 0.10.0
libtpu: 0.0.40
codegen_flags: <defaults>
</compile_context>

<pallas_src>
import functools

import jax
import jax.numpy as jnp
from jax.experimental import pallas as pl
from jax.experimental.pallas import tpu as pltpu

# Sobel taps (applied as cross-correlation, matching F.conv2d)
_KX = ((-1.0, 0.0, 1.0),
       (-2.0, 0.0, 2.0),
       (-1.0, 0.0, 1.0))
_KY = (( 1.0,  2.0,  1.0),
       ( 0.0,  0.0,  0.0),
       (-1.0, -2.0, -1.0))


def _sobel_kernel(x_ref, o_ref, *, H, W):
    # x_ref / o_ref: (P, H*W) -- each sublane row is one flattened image plane.
    P, HW = x_ref.shape
    # Compute in f32 (matches the torch f32 conv); bf16 VALU path is a
    # possible further saving on v6e/v7x but f32 keeps all chips identical.
    x = x_ref[...].astype(jnp.float32)

    # Boundary masks from the flat row-major index: cheap VPU integer ops,
    # everything stays (P, HW); no concatenate copies, no misaligned slices.
    flat = jax.lax.broadcasted_iota(jnp.int32, (P, HW), 1)
    col = flat % W
    top = flat < W                  # image row 0    -> no "up" neighbour
    bot = flat >= (H - 1) * W       # image row H-1  -> no "down" neighbour
    left = col == 0                 # image col 0    -> no "left" neighbour
    right = col == W - 1            # image col W-1  -> no "right" neighbour

    def nbr(v, shift, mask):
        # Circular lane rotation (XLU) + zero fill at the image boundary.
        # Non-negative shifts only (shift of -k expressed as HW - k).
        return jnp.where(mask, 0.0, pltpu.roll(v, shift, axis=1))

    up_v = nbr(x, W, top)           # x[i-1, j]
    dn_v = nbr(x, HW - W, bot)      # x[i+1, j]

    # Separable Sobel: vertical pass ...
    s = up_v + 2.0 * x + dn_v       # smoothing  -> feeds gx
    t = up_v - dn_v                 # difference -> feeds gy
    # ... then +-1 lane taps (zero boundary via masks, wrap via roll masked).
    gx = nbr(s, HW - 1, right) - nbr(s, 1, left)            # s[.,j+1] - s[.,j-1]
    gy = nbr(t, 1, left) + 2.0 * t + nbr(t, HW - 1, right)  # t[.,j-1]+2t+t[.,j+1]

    o_ref[...] = (jnp.abs(gx) + jnp.abs(gy)).astype(o_ref.dtype)


def _rows_per_block(n_rows, hw, budget_bytes=2 << 20, target_steps=8):
    """Sublane block height P: multiple of 8 (or the full extent), sized for
    ~target_steps grid steps and >= ~1 MiB blocks when the problem allows."""
    bytes_per_row = 4 * hw                              # f32 working copy
    cap = max(1, budget_bytes // max(bytes_per_row, 1))
    min_rows = max(1, -(-(1 << 20) // bytes_per_row))   # keep blocks >= ~1 MiB
    want = max(min_rows, pl.cdiv(n_rows, target_steps))
    p = min(cap, want)
    if p >= n_rows:
        return n_rows                                   # single full block
    p = max(8, (p // 8) * 8)                            # (8,128) sublane rule
    return n_rows if p >= n_rows else p


def sobelxy(x):
    """x: (B, C, H, W) -> (B, C, 1, H, W) (matches the torch Sobelxy module)."""
    B, C, H, W = x.shape
    N = B * C
    HW = H * W
    x_flat = x.reshape(N, HW)            # free: input is dense row-major

    P = _rows_per_block(N, HW)
    grid = (pl.cdiv(N, P),)              # partial last block is fine

    itemsize = jnp.dtype(x.dtype).itemsize
    cost = pl.CostEstimate(
        flops=14 * N * HW,                          # ~14 VPU ops / element
        transcendentals=0,
        bytes_accessed=2 * N * HW * itemsize,       # read once + write once
    )

    # TODO(synk): very large planes (8 rows x 4*H*W bytes >> budget) need an
    # H-tiled path with a 2-row halo fetched via manual make_async_copy from a
    # pl.ANY input; not required at these shapes.
    out = pl.pallas_call(
        functools.partial(_sobel_kernel, H=H, W=W),
        out_shape=jax.ShapeDtypeStruct((N, HW), x.dtype),
        grid_spec=pltpu.PrefetchScalarGridSpec(
            num_scalar_prefetch=0,
            grid=grid,
            in_specs=[pl.BlockSpec((P, HW), lambda i: (i, 0))],
            out_specs=pl.BlockSpec((P, HW), lambda i: (i, 0)),
        ),
        compiler_params=pltpu.CompilerParams(
            dimension_semantics=("parallel",),
            vmem_limit_bytes=48 * 1024 * 1024,      # headroom, < v7x 64 MiB
        ),
        cost_estimate=cost,
    )(x_flat)

    # Reproduce the torch output shape [B, C, 1, H, W].
    return out.reshape(B, C, 1, H, W)


def _sobelxy_ref(x):
    """Pure-JAX reference for verification."""
    kx = jnp.array(_KX, jnp.float32)
    ky = jnp.array(_KY, jnp.float32)
    xpad = jnp.pad(x, ((0, 0), (0, 0), (1, 1), (1, 1)))
    B, C, H, W = x.shape
    sx = jnp.zeros((B, C, H, W), jnp.float32)
    sy = jnp.zeros((B, C, H, W), jnp.float32)
    for di in range(3):
        for dj in range(3):
            win = xpad[:, :, di:di + H, dj:dj + W]
            sx = sx + kx[di, dj] * win
            sy = sy + ky[di, dj] * win
    return (jnp.abs(sx) + jnp.abs(sy)).reshape(B, C, 1, H, W)


if __name__ == "__main__":
    key = jax.random.PRNGKey(0)
    B, C, H, W = 2, 4, 16, 16
    x = jax.random.normal(key, (B, C, H, W), dtype=jnp.float32)

    y = sobelxy(x)
    y = jax.block_until_ready(y)

    y_ref = _sobelxy_ref(x)
    assert y.shape == (B, C, 1, H, W), y.shape
    assert jnp.allclose(y, y_ref, atol=1e-5, rtol=1e-5)
    print("KERNEL_OK")
</pallas_src>

<mosaic_0001>
module attributes {stable_mosaic.version = 11 : i64} {
  func.func @_sobel_kernel(%arg0: i32, %arg1: memref<8x256xf32, #tpu.memory_space<vmem>>, %arg2: memref<8x256xf32, #tpu.memory_space<vmem>>) attributes {dimension_semantics = [#tpu.dimension_semantics<parallel>], iteration_bounds = array<i64: 1>, scalar_prefetch = 0 : i64, scratch_operands = 0 : i64, tpu.core_type = #tpu.core_type<tc>, window_params = [{transform_indices = @transform_0, window_bounds = array<i64: 8, 256>}, {transform_indices = @transform_1, window_bounds = array<i64: 8, 256>}]} {
    %c0 = arith.constant 0 : index
    %c0_0 = arith.constant 0 : index
    %0 = vector.load %arg1[%c0, %c0_0] : memref<8x256xf32, #tpu.memory_space<vmem>>, vector<8x256xf32>
    %1 = tpu.iota {dimensions = array<i32: 1>} : vector<8x256xi32>
    %c16_i32 = arith.constant 16 : i32
    %c0_i32 = arith.constant 0 : i32
    %2 = arith.cmpi eq, %c16_i32, %c0_i32 : i32
    %c1_i32 = arith.constant 1 : i32
    %3 = arith.select %2, %c1_i32, %c16_i32 : i32
    %4 = vector.broadcast %3 : i32 to vector<8x256xi32>
    %5 = arith.remsi %1, %4 : vector<8x256xi32>
    %c0_i32_1 = arith.constant 0 : i32
    %6 = vector.broadcast %c0_i32_1 : i32 to vector<8x256xi32>
    %7 = arith.cmpi ne, %5, %6 : vector<8x256xi32>
    %c0_i32_2 = arith.constant 0 : i32
    %8 = vector.broadcast %c0_i32_2 : i32 to vector<8x256xi32>
    %9 = arith.cmpi slt, %5, %8 : vector<8x256xi32>
    %c0_i32_3 = arith.constant 0 : i32
    %10 = arith.cmpi slt, %3, %c0_i32_3 : i32
    %11 = vector.broadcast %10 : i1 to vector<8x256xi1>
    %12 = vector.broadcast %11 : vector<8x256xi1> to vector<8x256xi1>
    %13 = arith.xori %9, %12 : vector<8x256xi1>
    %14 = arith.andi %13, %7 : vector<8x256xi1>
    %15 = vector.broadcast %3 : i32 to vector<8x256xi32>
    %16 = arith.addi %5, %15 : vector<8x256xi32>
    %17 = arith.select %14, %16, %5 : vector<8x256xi1>, vector<8x256xi32>
    %c16_i32_4 = arith.constant 16 : i32
    %18 = vector.broadcast %c16_i32_4 : i32 to vector<8x256xi32>
    %19 = arith.cmpi slt, %1, %18 : vector<8x256xi32>
    %c240_i32 = arith.constant 240 : i32
    %20 = vector.broadcast %c240_i32 : i32 to vector<8x256xi32>
    %21 = arith.cmpi sge, %1, %20 : vector<8x256xi32>
    %c0_i32_5 = arith.constant 0 : i32
    %22 = vector.broadcast %c0_i32_5 : i32 to vector<8x256xi32>
    %23 = arith.cmpi eq, %17, %22 : vector<8x256xi32>
    %c15_i32 = arith.constant 15 : i32
    %24 = vector.broadcast %c15_i32 : i32 to vector<8x256xi32>
    %25 = arith.cmpi eq, %17, %24 : vector<8x256xi32>
    %c16_i32_6 = arith.constant 16 : i32
    %26 = tpu.dynamic_rotate %0 by %c16_i32_6 dim 1 : vector<8x256xf32>, i32 -> vector<8x256xf32>
    %cst = arith.constant 0.000000e+00 : f32
    %27 = vector.broadcast %cst : f32 to vector<8x256xf32>
    %28 = arith.select %19, %27, %26 : vector<8x256xi1>, vector<8x256xf32>
    %c240_i32_7 = arith.constant 240 : i32
    %29 = tpu.dynamic_rotate %0 by %c240_i32_7 dim 1 : vector<8x256xf32>, i32 -> vector<8x256xf32>
    %cst_8 = arith.constant 0.000000e+00 : f32
    %30 = vector.broadcast %cst_8 : f32 to vector<8x256xf32>
    %31 = arith.select %21, %30, %29 : vector<8x256xi1>, vector<8x256xf32>
    %cst_9 = arith.constant 2.000000e+00 : f32
    %32 = vector.broadcast %cst_9 : f32 to vector<8x256xf32>
    %33 = arith.mulf %32, %0 : vector<8x256xf32>
    %34 = arith.addf %28, %33 : vector<8x256xf32>
    %35 = arith.addf %34, %31 : vector<8x256xf32>
    %36 = arith.subf %28, %31 : vector<8x256xf32>
    %c255_i32 = arith.constant 255 : i32
    %37 = tpu.dynamic_rotate %35 by %c255_i32 dim 1 : vector<8x256xf32>, i32 -> vector<8x256xf32>
    %cst_10 = arith.constant 0.000000e+00 : f32
    %38 = vector.broadcast %cst_10 : f32 to vector<8x256xf32>
    %39 = arith.select %25, %38, %37 : vector<8x256xi1>, vector<8x256xf32>
    %c1_i32_11 = arith.constant 1 : i32
    %40 = tpu.dynamic_rotate %35 by %c1_i32_11 dim 1 : vector<8x256xf32>, i32 -> vector<8x256xf32>
    %cst_12 = arith.constant 0.000000e+00 : f32
    %41 = vector.broadcast %cst_12 : f32 to vector<8x256xf32>
    %42 = arith.select %23, %41, %40 : vector<8x256xi1>, vector<8x256xf32>
    %43 = arith.subf %39, %42 : vector<8x256xf32>
    %c1_i32_13 = arith.constant 1 : i32
    %44 = tpu.dynamic_rotate %36 by %c1_i32_13 dim 1 : vector<8x256xf32>, i32 -> vector<8x256xf32>
    %cst_14 = arith.constant 0.000000e+00 : f32
    %45 = vector.broadcast %cst_14 : f32 to vector<8x256xf32>
    %46 = arith.select %23, %45, %44 : vector<8x256xi1>, vector<8x256xf32>
    %cst_15 = arith.constant 2.000000e+00 : f32
    %47 = vector.broadcast %cst_15 : f32 to vector<8x256xf32>
    %48 = arith.mulf %47, %36 : vector<8x256xf32>
    %49 = arith.addf %46, %48 : vector<8x256xf32>
    %c255_i32_16 = arith.constant 255 : i32
    %50 = tpu.dynamic_rotate %36 by %c255_i32_16 dim 1 : vector<8x256xf32>, i32 -> vector<8x256xf32>
    %cst_17 = arith.constant 0.000000e+00 : f32
    %51 = vector.broadcast %cst_17 : f32 to vector<8x256xf32>
    %52 = arith.select %25, %51, %50 : vector<8x256xi1>, vector<8x256xf32>
    %53 = arith.addf %49, %52 : vector<8x256xf32>
    %54 = math.absf %43 : vector<8x256xf32>
    %55 = math.absf %53 : vector<8x256xf32>
    %56 = arith.addf %54, %55 : vector<8x256xf32>
    %c0_18 = arith.constant 0 : index
    %c0_19 = arith.constant 0 : index
    %57 = vector.load %arg2[%c0_18, %c0_19] : memref<8x256xf32, #tpu.memory_space<vmem>>, vector<8x256xf32>
    tpu.vector_store %arg2[%c0_18, %c0_19], %56 {strides = array<i32>} : memref<8x256xf32, #tpu.memory_space<vmem>>, vector<8x256xf32>,
    return
  }
  func.func @transform_0(%arg0: i32) -> (i32, i32) {
    %c0_i32 = arith.constant 0 : i32
    %c0_i32_0 = arith.constant 0 : i32
    return %arg0, %c0_i32 : i32, i32
  }
  func.func @transform_1(%arg0: i32) -> (i32, i32) {
    %c0_i32 = arith.constant 0 : i32
    %c0_i32_0 = arith.constant 0 : i32
    return %arg0, %c0_i32 : i32, i32
  }
}

</mosaic_0001>

<bundles_post_ra>
// kernel: tpu_custom_call.1
= control target key start
LH: loop header
LB: loop body
LE: loop exit
PB: predicated region body
PF: predicated region fallthrough
CT: control target
= control target key end

     0   :  { %6 = vsyncpa [#allocation3], 0  ;;  %s276_s0 = inlined_call_operand.hbm [shape: f32[8,256], index: 0, kind: input, shape index: {}]   ;;  %s277_s1 = inlined_call_operand.hbm [shape: f32[8,256], index: 1, kind: output, shape index: {}]  }
   0x1   :  { %7 = vsyncpa [#allocation4], 0  ;;  %s198_s6 = smov [#allocation2]  }
   0x2   :  { %s14_s7 = sshll.u32 %s198_s6, 4  ;;  %s15_s7 = int_to_ptr.vmem [resolvable:$true] %s14_s7 }
   0x3   :  { %s162_s8 = scalar_lea.vmem %s15_s7, 256  ;;  %p167_p1 = scmp.lt.s32.totalorder %s15_s7, %s15_s7 }
   0x4   :  { %p163_p0 = scmp.ne.s32.totalorder %s15_s7, %s162_s8  ;;  %p168_p2 = scmp.lt.s32.totalorder %s162_s8, %s162_s8 }
   0x6   :  { %p169_p3 = por %p168_p2, %p167_p1 }
   0x8   :  { %p170_p4 = pnand %p169_p3, %p163_p0 }
   0xa   :  { %173 = shalt.err (!%p170_p4)
}
   0xb   :  { %17 = dma.hbm_to_vmem [thread:$0]  %s276_s0, 256, %s15_s7, [#allocation3]  }
   0xc   :  { %194 = dma.done.wait [#allocation3], 256  }
   0xd   :  { %195 = vsyncadd [#allocation3], 4294967040  ;;  %v21_v0 = vld [vmem:[#allocation2] sm:$0xff]  ;;  %s199_s11 = smov 112   ;;  %s200_s12 = smov 16   ;;  %v22_v1 = vld [vmem:[#allocation2 + $0x8] sm:$0xff]  ;;  %v23_v2 = vlaneseq }
   0xe   :  { %66 = vrot.lane.b32.xlu1 %v21_v0, %s199_s11  ;;  %58 = vrot.lane.b32.xlu0 %v21_v0, %s200_s12  ;;  %v75_v7 = vmul.f32 2.0, %v21_v0  ;;  %v76_v8 = vmul.f32 2.0, %v22_v1  ;;  %s201_s0 = smov 1   ;;  %s202_s13 = smov 127  }
   0xf   :  { %v217_v3 = vand.u32 127, %v23_v2  ;;  %s203_s14 = smov [#allocation5]  }
  0x10   :  { %s139_s15 = sshll.u32 %s203_s14, 4  ;;  %s140_s15 = int_to_ptr.vmem [resolvable:$true] %s139_s15 }
  0x11   :  { %v25_v4 = vadd.s32 128, %v217_v3  ;;  %vm70_vm0 = vcmp.lt.s32.totalorder %v217_v3, 112  ;;  %vm50_vm1 = vcmp.lt.s32.totalorder %v217_v3, 16  ;;  %v30_v25 = vand.u32 15, %v217_v3  ;;  %s174_s16 = scalar_lea.vmem %s140_s15, 256  ;;  %p179_p6 = scmp.lt.s32.totalorder %s140_s15, %s140_s15 }
  0x12   :  { %68 = vrot.lane.b32.xlu1 %v22_v1, %s199_s11  ;;  %60 = vrot.lane.b32.xlu0 %v22_v1, %s200_s12  ;;  %vm96_vm3 = vcmp.lt.s32.totalorder %v217_v3, 1  ;;  %vm87_vm4 = vcmp.lt.s32.totalorder %v217_v3, 127  ;;  %p175_p5 = scmp.ne.s32.totalorder %s140_s15, %s174_s16  ;;  %p180_p7 = scmp.lt.s32.totalorder %s174_s16, %s174_s16 }
  0x13   :  { %vm53_vm2 = vcmp.ge.s32.totalorder %v25_v4, 240  ;;  %v37_v26 = vand.u32 15, %v25_v4  ;;  %vm225_vm5 = vcmp.eq.s32.totalorder %v30_v25, 0  ;;  %vm237_vm7 = vcmp.eq.s32.totalorder %v30_v25, 15 }
  0x14   :  { %p181_p8 = por %p180_p7, %p179_p6 }
  0x15   :  { %vm231_vm6 = vcmp.eq.s32.totalorder %v37_v26, 0  ;;  %vm241_vm8 = vcmp.eq.s32.totalorder %v37_v26, 15 }
  0x16   :  { %p182_p9 = pnand %p181_p8, %p175_p5 }
  0x80   :  { %v67_v5 = vpop.permute.xlu1 %66  ;;  %v59_v6 = vpop.permute.xlu0 %58 }
  0x84   :  { %v69_v9 = vpop.permute.xlu1 %68  ;;  %v61_v10 = vpop.permute.xlu0 %60 }
  0x85   :  { %v71_v11 = vsel %vm70_vm0, %v67_v5, %v69_v9  ;;  %v72_v12 = vsel %vm70_vm0, %v69_v9, %v67_v5  ;;  %v62_v13 = vsel %vm50_vm1, %v59_v6, %v61_v10  ;;  %v63_v14 = vsel %vm50_vm1, %v61_v10, %v59_v6 }
  0x86   :  { %v74_v15 = vsel %vm53_vm2, 0.0, %v72_v12  ;;  %v64_v16 = vsel %vm50_vm1, 0.0, %v63_v14  ;;  %v78_v18 = vadd.f32 %v76_v8, %v62_v13 }
  0x87   :  { %v77_v17 = vadd.f32 %v75_v7, %v64_v16  ;;  %v81_v19 = vsub.f32 %v64_v16, %v71_v11  ;;  %v82_v20 = vsub.f32 %v62_v13, %v74_v15 }
  0x88   :  { %v80_v21 = vadd.f32 %v78_v18, %v74_v15 }
  0x89   :  { %103 = vrot.lane.b32.xlu0 %v81_v19, %s201_s0  ;;  %105 = vrot.lane.b32.xlu1 %v82_v20, %s201_s0  ;;  %v79_v22 = vadd.f32 %v77_v17, %v71_v11  ;;  %v111_v42 = vmul.f32 2.0, %v81_v19  ;;  %v112_v46 = vmul.f32 2.0, %v82_v20 }
  0x8d   :  { %85 = vrot.lane.b32.xlu1 %v80_v21, %s202_s13  ;;  %83 = vrot.lane.b32.xlu0 %v79_v22, %s202_s13 }
  0x91   :  { %94 = vrot.lane.b32.xlu1 %v80_v21, %s201_s0  ;;  %92 = vrot.lane.b32.xlu0 %v79_v22, %s201_s0 }
  0x95   :  { %117 = vrot.lane.b32.xlu1 %v82_v20, %s202_s13  ;;  %115 = vrot.lane.b32.xlu0 %v81_v19, %s202_s13 }
  0xfb   :  { %v104_v23 = vpop.permute.xlu0 %103  ;;  %v106_v24 = vpop.permute.xlu1 %105 }
  0xfc   :  { %v108_v30 = vsel %vm96_vm3, %v106_v24, %v104_v23  ;;  %v107_v32 = vsel %vm96_vm3, %v104_v23, %v106_v24 }
  0xfd   :  { %v109_v38 = vsel %vm225_vm5, 0.0, %v108_v30  ;;  %v110_v43 = vsel %vm231_vm6, 0.0, %v107_v32 }
  0xfe   :  { %v113_v48 = vadd.f32 %v111_v42, %v109_v38  ;;  %v114_v53 = vadd.f32 %v112_v46, %v110_v43 }
  0xff   :  { %v86_v27 = vpop.permute.xlu1 %85  ;;  %v84_v28 = vpop.permute.xlu0 %83 }
 0x100   :  { %v88_v35 = vsel %vm87_vm4, %v84_v28, %v86_v27  ;;  %v89_v39 = vsel %vm87_vm4, %v86_v27, %v84_v28 }
 0x101   :  { %v90_v47 = vsel %vm237_vm7, 0.0, %v88_v35  ;;  %v91_v49 = vsel %vm241_vm8, 0.0, %v89_v39 }
 0x103   :  { %v95_v36 = vpop.permute.xlu1 %94  ;;  %v93_v37 = vpop.permute.xlu0 %92 }
 0x104   :  { %v97_v40 = vsel %vm96_vm3, %v93_v37, %v95_v36  ;;  %v98_v41 = vsel %vm96_vm3, %v95_v36, %v93_v37 }
 0x105   :  { %v99_v44 = vsel %vm225_vm5, 0.0, %v98_v41  ;;  %v100_v45 = vsel %vm231_vm6, 0.0, %v97_v40 }
 0x106   :  { %v101_v50 = vsub.f32 %v90_v47, %v99_v44  ;;  %v102_v54 = vsub.f32 %v91_v49, %v100_v45 }
 0x107   :  { %v118_v51 = vpop.permute.xlu1 %117  ;;  %v116_v52 = vpop.permute.xlu0 %115 }
 0x108   :  { %v119_v55 = vsel %vm87_vm4, %v116_v52, %v118_v51  ;;  %v120_v56 = vsel %vm87_vm4, %v118_v51, %v116_v52  ;;  %v125_v61 = vand.u32 2147483647, %v101_v50  ;;  %v126_v62 = vand.u32 2147483647, %v102_v54 }
 0x109   :  { %v121_v57 = vsel %vm237_vm7, 0.0, %v119_v55  ;;  %v122_v58 = vsel %vm241_vm8, 0.0, %v120_v56 }
 0x10a   :  { %v123_v59 = vadd.f32 %v121_v57, %v113_v48  ;;  %v124_v60 = vadd.f32 %v122_v58, %v114_v53 }
 0x10c   :  { %v127_v63 = vand.u32 2147483647, %v123_v59  ;;  %v128_v0 = vand.u32 2147483647, %v124_v60 }
 0x10e   :  { %v129_v1 = vadd.f32 %v127_v63, %v125_v61  ;;  %v130_v2 = vadd.f32 %v128_v0, %v126_v62 }
 0x110   :  { %131 = vst [vmem:[#allocation5] sm:$0xff] %v129_v1  ;;  %132 = vst [vmem:[#allocation5 + $0x8] sm:$0xff] %v130_v2 }
 0x111   :  { %185 = shalt.err (!%p182_p9)
}
 0x112   :  { %142 = dma.vmem_to_hbm [thread:$0]  %s140_s15, 256, %s277_s1, [#allocation4]  }
 0x113   :  { %196 = dma.done.wait [#allocation4], 256  }
 0x114   :  { %197 = vsyncadd [#allocation4], 4294967040 }
 0x115   :  { %146 = vsyncpa [#allocation3], 1 }
 0x116   :  { %147 = vsyncpa [#allocation4], 1 }

</bundles_post_ra>
